<compile_context>
chip_gen: v6e
topology: v6e:2x2x1
jax: 0.10.0
libtpu: 0.0.40
codegen_flags: <defaults>
</compile_context>

<pallas_src>
import jax
import jax.numpy as jnp
from jax.experimental import pallas as pl
from jax.experimental.pallas import tpu as pltpu

OUT_DIM = 10
PAD = 128  # lane-dense width used for every hidden/output layer


def _round_up(x, m):
    return ((x + m - 1) // m) * m


def _mlp_kernel(x_ref,
                w0, b0, w1, b1, w2, b2, w3, b3, w4, b4, w5, b5,
                out_ref):
    """One batch tile of the whole MLP. Weights/biases are VMEM-resident."""
    # f32 -> bf16 cast happens here on the VPU, hidden under the x-tile DMA.
    h = x_ref[...].astype(jnp.bfloat16)

    def linear(h, w_ref, b_ref):
        # bf16 MXU matmul with f32 accumulation; bias-add in f32.
        return jnp.dot(h.astype(jnp.bfloat16), w_ref[...],
                       preferred_element_type=jnp.float32) + b_ref[...]

    h = jnp.maximum(linear(h, w0, b0), 0.0)   # fc0 + relu
    h = jnp.maximum(linear(h, w1, b1), 0.0)   # fc1 + relu
    h = jnp.maximum(linear(h, w2, b2), 0.0)   # fc2 + relu
    h = jnp.maximum(linear(h, w3, b3), 0.0)   # fc3 + relu
    h = jnp.maximum(linear(h, w4, b4), 0.0)   # fc4 + relu
    logits = linear(h, w5, b5)                # fc5, (TB, 128); cols >= 10 are ~-1e30

    # log_softmax over the last dim in f32 (padded cols -> exp(-huge) = 0).
    m = jnp.max(logits, axis=-1, keepdims=True)
    shifted = logits - m
    lse = jnp.log(jnp.sum(jnp.exp(shifted), axis=-1, keepdims=True))
    out_ref[...] = (shifted - lse).astype(out_ref.dtype)


def mlp_forward(x, params, *, tb=1024):
    """x: (B, image_size) f32. params: list of (W (in,out) bf16, b (1,out) f32).

    Returns lane-dense padded log-probabilities of shape (B, 128) in bf16
    (columns >= OUT_DIM are ~-inf); callers slice [:, :OUT_DIM] as needed."""
    B, D = x.shape

    # Batch tile: multiple of 16 (bf16 sublane packing). For large B cap TB at
    # ~B/2 so there are >= 2 grid tiles and the "parallel" axis can shard
    # across both TensorCores on v7x.
    TB = max(16, min(tb, _round_up((B + 1) // 2, 16)))
    n_tiles = pl.cdiv(B, TB)

    flat = []
    for w, b in params:
        flat += [w, b]

    def const_spec(arr):
        # Full-array block, same block every grid step -> stays VMEM-resident.
        return pl.BlockSpec(arr.shape, lambda i: (0, 0))

    in_specs = [pl.BlockSpec((TB, D), lambda i: (i, 0))]
    in_specs += [const_spec(a) for a in flat]
    out_specs = pl.BlockSpec((TB, PAD), lambda i: (i, 0))

    # Advisory scheduling hint for XLA around the custom call.
    flops = 2 * B * sum(w.shape[0] * w.shape[1] for w, _ in params)
    bytes_accessed = (x.size * 4
                      + sum(w.size * 2 + b.size * 4 for w, b in params)
                      + B * PAD * 2)
    transcendentals = B * (PAD + 1)  # exp per lane + log per row

    return pl.pallas_call(
        _mlp_kernel,
        out_shape=jax.ShapeDtypeStruct((B, PAD), jnp.bfloat16),
        grid=(n_tiles,),
        in_specs=in_specs,
        out_specs=out_specs,
        compiler_params=pltpu.CompilerParams(
            dimension_semantics=("parallel",)),
        cost_estimate=pl.CostEstimate(
            flops=flops,
            transcendentals=transcendentals,
            bytes_accessed=bytes_accessed),
    )(x, *flat)


def init_params(image_size, key):
    """Deterministic init matching the layer shapes of module E.

    Weights stored as (in, out) = W.T in bf16; biases as (1, out) f32.
    Every hidden/output width is padded up to 128 lanes: zero weight rows/cols
    and zero bias, except the final layer's padded bias columns = -1e30 so the
    padded logits vanish under log_softmax."""
    dims = [(image_size, 128), (128, 64), (64, OUT_DIM),
            (OUT_DIM, OUT_DIM), (OUT_DIM, OUT_DIM), (OUT_DIM, OUT_DIM)]
    params = []
    for i, (fan_in, fan_out) in enumerate(dims):
        kw, kb, key = jax.random.split(key, 3)
        bound = 1.0 / (fan_in ** 0.5)   # PyTorch Linear default init range
        w = jax.random.uniform(kw, (fan_in, fan_out), jnp.float32, -bound, bound)
        b = jax.random.uniform(kb, (1, fan_out), jnp.float32, -bound, bound)

        in_tgt = fan_in if i == 0 else PAD          # match previous padded out
        out_tgt = _round_up(fan_out, PAD)
        w = jnp.pad(w, ((0, in_tgt - fan_in), (0, out_tgt - fan_out)))
        bias_pad = -1e30 if i == len(dims) - 1 else 0.0
        b = jnp.pad(b, ((0, 0), (0, out_tgt - fan_out)), constant_values=bias_pad)

        params.append((w.astype(jnp.bfloat16), b.astype(jnp.float32)))
    return params


def reference_forward(x, params):
    """Pure-JAX reference with the same precision policy as the kernel."""
    h = x.astype(jnp.float32)
    n = len(params)
    for i, (w, b) in enumerate(params):
        y = jnp.dot(h.astype(jnp.bfloat16), w,
                    preferred_element_type=jnp.float32) + b
        h = jnp.maximum(y, 0.0) if i < n - 1 else y
    m = jnp.max(h, axis=-1, keepdims=True)
    sh = h - m
    lse = jnp.log(jnp.sum(jnp.exp(sh), axis=-1, keepdims=True))
    return (sh - lse)[:, :OUT_DIM]


class EPallas:
    def __init__(self, image_size, key):
        self.image_size = image_size
        self.params = init_params(image_size, key)

    def __call__(self, x):
        # x.view(-1, image_size)
        x = x.reshape(-1, self.image_size).astype(jnp.float32)
        out = mlp_forward(x, self.params)          # (B, 128) bf16, lane-dense
        # Downstream consumers can use the padded output directly (argmax/NLL);
        # slice here only to match the module's (B, 10) contract.
        return out[:, :OUT_DIM]


if __name__ == "__main__":
    key = jax.random.PRNGKey(0)
    kx, kp = jax.random.split(key)

    image_size = 16 * 16  # e.g. a 16x16 single-channel image
    # Input in NCHW-like layout: (batch=2, channels=1, 16, 16)
    x = jax.random.normal(kx, (2, 1, 16, 16), dtype=jnp.float32)

    model = EPallas(image_size, kp)
    out = model(x)
    out = jax.block_until_ready(out)

    assert out.shape == (2, OUT_DIM)
    out_f32 = out.astype(jnp.float32)

    # log_softmax rows should (approximately) exp-sum to 1 (bf16 output).
    row_sums = jnp.sum(jnp.exp(out_f32), axis=1)
    assert jnp.allclose(row_sums, jnp.ones_like(row_sums), atol=2e-2)

    # Compare against a pure-JAX reference with the same precision policy
    # (tolerance loosened for the bf16 output cast).
    ref = reference_forward(x.reshape(-1, image_size), model.params)
    assert jnp.allclose(out_f32, ref, atol=6e-2, rtol=6e-2)

    print("KERNEL_OK")
</pallas_src>

<mosaic_0001>
module attributes {stable_mosaic.version = 11 : i64} {
  func.func @_mlp_kernel(%arg0: i32, %arg1: memref<16x256xf32, #tpu.memory_space<vmem>>, %arg2: memref<256x128xbf16, #tpu.memory_space<vmem>>, %arg3: memref<1x128xf32, #tpu.memory_space<vmem>>, %arg4: memref<128x128xbf16, #tpu.memory_space<vmem>>, %arg5: memref<1x128xf32, #tpu.memory_space<vmem>>, %arg6: memref<128x128xbf16, #tpu.memory_space<vmem>>, %arg7: memref<1x128xf32, #tpu.memory_space<vmem>>, %arg8: memref<128x128xbf16, #tpu.memory_space<vmem>>, %arg9: memref<1x128xf32, #tpu.memory_space<vmem>>, %arg10: memref<128x128xbf16, #tpu.memory_space<vmem>>, %arg11: memref<1x128xf32, #tpu.memory_space<vmem>>, %arg12: memref<128x128xbf16, #tpu.memory_space<vmem>>, %arg13: memref<1x128xf32, #tpu.memory_space<vmem>>, %arg14: memref<16x128xbf16, #tpu.memory_space<vmem>>) attributes {dimension_semantics = [#tpu.dimension_semantics<parallel>], iteration_bounds = array<i64: 1>, scalar_prefetch = 0 : i64, scratch_operands = 0 : i64, tpu.core_type = #tpu.core_type<tc>, window_params = [{transform_indices = @transform_0, window_bounds = array<i64: 16, 256>}, {pipeline_mode = #tpu.pipeline_mode<synchronous>, transform_indices = @transform_1, window_bounds = array<i64: 256, 128>}, {pipeline_mode = #tpu.pipeline_mode<synchronous>, transform_indices = @transform_2, window_bounds = array<i64: 1, 128>}, {pipeline_mode = #tpu.pipeline_mode<synchronous>, transform_indices = @transform_3, window_bounds = array<i64: 128, 128>}, {pipeline_mode = #tpu.pipeline_mode<synchronous>, transform_indices = @transform_4, window_bounds = array<i64: 1, 128>}, {pipeline_mode = #tpu.pipeline_mode<synchronous>, transform_indices = @transform_5, window_bounds = array<i64: 128, 128>}, {pipeline_mode = #tpu.pipeline_mode<synchronous>, transform_indices = @transform_6, window_bounds = array<i64: 1, 128>}, {pipeline_mode = #tpu.pipeline_mode<synchronous>, transform_indices = @transform_7, window_bounds = array<i64: 128, 128>}, {pipeline_mode = #tpu.pipeline_mode<synchronous>, transform_indices = @transform_8, window_bounds = array<i64: 1, 128>}, {pipeline_mode = #tpu.pipeline_mode<synchronous>, transform_indices = @transform_9, window_bounds = array<i64: 128, 128>}, {pipeline_mode = #tpu.pipeline_mode<synchronous>, transform_indices = @transform_10, window_bounds = array<i64: 1, 128>}, {pipeline_mode = #tpu.pipeline_mode<synchronous>, transform_indices = @transform_11, window_bounds = array<i64: 128, 128>}, {pipeline_mode = #tpu.pipeline_mode<synchronous>, transform_indices = @transform_12, window_bounds = array<i64: 1, 128>}, {transform_indices = @transform_13, window_bounds = array<i64: 16, 128>}]} {
    %c0 = arith.constant 0 : index
    %c0_0 = arith.constant 0 : index
    %0 = vector.load %arg1[%c0, %c0_0] : memref<16x256xf32, #tpu.memory_space<vmem>>, vector<16x256xf32>
    %1 = arith.truncf %0 : vector<16x256xf32> to vector<16x256xbf16>
    %c0_1 = arith.constant 0 : index
    %c0_2 = arith.constant 0 : index
    %2 = vector.load %arg2[%c0_1, %c0_2] : memref<256x128xbf16, #tpu.memory_space<vmem>>, vector<256x128xbf16>
    %cst = arith.constant dense<0.000000e+00> : vector<16x128xf32>
    %3 = tpu.matmul %1, %2, %cst {dimension_numbers = #tpu.dot_dimension_numbers<[1], [0], [0], [1], [0, 0, 1, 1], [], []>} : vector<16x256xbf16>, vector<256x128xbf16>, vector<16x128xf32> -> vector<16x128xf32>
    %c0_3 = arith.constant 0 : index
    %c0_4 = arith.constant 0 : index
    %4 = vector.load %arg3[%c0_3, %c0_4] : memref<1x128xf32, #tpu.memory_space<vmem>>, vector<1x128xf32>
    %5 = vector.broadcast %4 : vector<1x128xf32> to vector<16x128xf32>
    %6 = arith.addf %3, %5 : vector<16x128xf32>
    %cst_5 = arith.constant 0.000000e+00 : f32
    %7 = vector.broadcast %cst_5 : f32 to vector<16x128xf32>
    %8 = arith.maximumf %6, %7 : vector<16x128xf32>
    %9 = arith.truncf %8 : vector<16x128xf32> to vector<16x128xbf16>
    %c0_6 = arith.constant 0 : index
    %c0_7 = arith.constant 0 : index
    %10 = vector.load %arg4[%c0_6, %c0_7] : memref<128x128xbf16, #tpu.memory_space<vmem>>, vector<128x128xbf16>
    %cst_8 = arith.constant dense<0.000000e+00> : vector<16x128xf32>
    %11 = tpu.matmul %9, %10, %cst_8 {dimension_numbers = #tpu.dot_dimension_numbers<[1], [0], [0], [1], [0, 0, 1, 1], [], []>} : vector<16x128xbf16>, vector<128x128xbf16>, vector<16x128xf32> -> vector<16x128xf32>
    %c0_9 = arith.constant 0 : index
    %c0_10 = arith.constant 0 : index
    %12 = vector.load %arg5[%c0_9, %c0_10] : memref<1x128xf32, #tpu.memory_space<vmem>>, vector<1x128xf32>
    %13 = vector.broadcast %12 : vector<1x128xf32> to vector<16x128xf32>
    %14 = arith.addf %11, %13 : vector<16x128xf32>
    %cst_11 = arith.constant 0.000000e+00 : f32
    %15 = vector.broadcast %cst_11 : f32 to vector<16x128xf32>
    %16 = arith.maximumf %14, %15 : vector<16x128xf32>
    %17 = arith.truncf %16 : vector<16x128xf32> to vector<16x128xbf16>
    %c0_12 = arith.constant 0 : index
    %c0_13 = arith.constant 0 : index
    %18 = vector.load %arg6[%c0_12, %c0_13] : memref<128x128xbf16, #tpu.memory_space<vmem>>, vector<128x128xbf16>
    %cst_14 = arith.constant dense<0.000000e+00> : vector<16x128xf32>
    %19 = tpu.matmul %17, %18, %cst_14 {dimension_numbers = #tpu.dot_dimension_numbers<[1], [0], [0], [1], [0, 0, 1, 1], [], []>} : vector<16x128xbf16>, vector<128x128xbf16>, vector<16x128xf32> -> vector<16x128xf32>
    %c0_15 = arith.constant 0 : index
    %c0_16 = arith.constant 0 : index
    %20 = vector.load %arg7[%c0_15, %c0_16] : memref<1x128xf32, #tpu.memory_space<vmem>>, vector<1x128xf32>
    %21 = vector.broadcast %20 : vector<1x128xf32> to vector<16x128xf32>
    %22 = arith.addf %19, %21 : vector<16x128xf32>
    %cst_17 = arith.constant 0.000000e+00 : f32
    %23 = vector.broadcast %cst_17 : f32 to vector<16x128xf32>
    %24 = arith.maximumf %22, %23 : vector<16x128xf32>
    %25 = arith.truncf %24 : vector<16x128xf32> to vector<16x128xbf16>
    %c0_18 = arith.constant 0 : index
    %c0_19 = arith.constant 0 : index
    %26 = vector.load %arg8[%c0_18, %c0_19] : memref<128x128xbf16, #tpu.memory_space<vmem>>, vector<128x128xbf16>
    %cst_20 = arith.constant dense<0.000000e+00> : vector<16x128xf32>
    %27 = tpu.matmul %25, %26, %cst_20 {dimension_numbers = #tpu.dot_dimension_numbers<[1], [0], [0], [1], [0, 0, 1, 1], [], []>} : vector<16x128xbf16>, vector<128x128xbf16>, vector<16x128xf32> -> vector<16x128xf32>
    %c0_21 = arith.constant 0 : index
    %c0_22 = arith.constant 0 : index
    %28 = vector.load %arg9[%c0_21, %c0_22] : memref<1x128xf32, #tpu.memory_space<vmem>>, vector<1x128xf32>
    %29 = vector.broadcast %28 : vector<1x128xf32> to vector<16x128xf32>
    %30 = arith.addf %27, %29 : vector<16x128xf32>
    %cst_23 = arith.constant 0.000000e+00 : f32
    %31 = vector.broadcast %cst_23 : f32 to vector<16x128xf32>
    %32 = arith.maximumf %30, %31 : vector<16x128xf32>
    %33 = arith.truncf %32 : vector<16x128xf32> to vector<16x128xbf16>
    %c0_24 = arith.constant 0 : index
    %c0_25 = arith.constant 0 : index
    %34 = vector.load %arg10[%c0_24, %c0_25] : memref<128x128xbf16, #tpu.memory_space<vmem>>, vector<128x128xbf16>
    %cst_26 = arith.constant dense<0.000000e+00> : vector<16x128xf32>
    %35 = tpu.matmul %33, %34, %cst_26 {dimension_numbers = #tpu.dot_dimension_numbers<[1], [0], [0], [1], [0, 0, 1, 1], [], []>} : vector<16x128xbf16>, vector<128x128xbf16>, vector<16x128xf32> -> vector<16x128xf32>
    %c0_27 = arith.constant 0 : index
    %c0_28 = arith.constant 0 : index
    %36 = vector.load %arg11[%c0_27, %c0_28] : memref<1x128xf32, #tpu.memory_space<vmem>>, vector<1x128xf32>
    %37 = vector.broadcast %36 : vector<1x128xf32> to vector<16x128xf32>
    %38 = arith.addf %35, %37 : vector<16x128xf32>
    %cst_29 = arith.constant 0.000000e+00 : f32
    %39 = vector.broadcast %cst_29 : f32 to vector<16x128xf32>
    %40 = arith.maximumf %38, %39 : vector<16x128xf32>
    %41 = arith.truncf %40 : vector<16x128xf32> to vector<16x128xbf16>
    %c0_30 = arith.constant 0 : index
    %c0_31 = arith.constant 0 : index
    %42 = vector.load %arg12[%c0_30, %c0_31] : memref<128x128xbf16, #tpu.memory_space<vmem>>, vector<128x128xbf16>
    %cst_32 = arith.constant dense<0.000000e+00> : vector<16x128xf32>
    %43 = tpu.matmul %41, %42, %cst_32 {dimension_numbers = #tpu.dot_dimension_numbers<[1], [0], [0], [1], [0, 0, 1, 1], [], []>} : vector<16x128xbf16>, vector<128x128xbf16>, vector<16x128xf32> -> vector<16x128xf32>
    %c0_33 = arith.constant 0 : index
    %c0_34 = arith.constant 0 : index
    %44 = vector.load %arg13[%c0_33, %c0_34] : memref<1x128xf32, #tpu.memory_space<vmem>>, vector<1x128xf32>
    %45 = vector.broadcast %44 : vector<1x128xf32> to vector<16x128xf32>
    %46 = arith.addf %43, %45 : vector<16x128xf32>
    %cst_35 = arith.constant dense<0xFF800000> : vector<16xf32>
    %47 = vector.multi_reduction <maximumf>, %46, %cst_35 [1] : vector<16x128xf32> to vector<16xf32>
    %48 = vector.shape_cast %47 : vector<16xf32> to vector<16x1xf32>
    %49 = vector.broadcast %48 : vector<16x1xf32> to vector<16x128xf32>
    %50 = arith.subf %46, %49 : vector<16x128xf32>
    %51 = math.exp %50 : vector<16x128xf32>
    %cst_36 = arith.constant dense<0.000000e+00> : vector<16xf32>
    %52 = vector.multi_reduction <add>, %51, %cst_36 [1] : vector<16x128xf32> to vector<16xf32>
    %53 = vector.shape_cast %52 : vector<16xf32> to vector<16x1xf32>
    %54 = math.log %53 : vector<16x1xf32>
    %55 = vector.broadcast %54 : vector<16x1xf32> to vector<16x128xf32>
    %56 = arith.subf %50, %55 : vector<16x128xf32>
    %57 = arith.truncf %56 : vector<16x128xf32> to vector<16x128xbf16>
    %c0_37 = arith.constant 0 : index
    %c0_38 = arith.constant 0 : index
    %58 = vector.load %arg14[%c0_37, %c0_38] : memref<16x128xbf16, #tpu.memory_space<vmem>>, vector<16x128xbf16>
    tpu.vector_store %arg14[%c0_37, %c0_38], %57 {strides = array<i32>} : memref<16x128xbf16, #tpu.memory_space<vmem>>, vector<16x128xbf16>,
    return
  }
  func.func @transform_0(%arg0: i32) -> (i32, i32) {
    %c0_i32 = arith.constant 0 : i32
    %c0_i32_0 = arith.constant 0 : i32
    return %arg0, %c0_i32 : i32, i32
  }
  func.func @transform_1(%arg0: i32) -> (i32, i32) {
    %c0_i32 = arith.constant 0 : i32
    %c0_i32_0 = arith.constant 0 : i32
    %c0_i32_1 = arith.constant 0 : i32
    return %c0_i32, %c0_i32_0 : i32, i32
  }
  func.func @transform_2(%arg0: i32) -> (i32, i32) {
    %c0_i32 = arith.constant 0 : i32
    %c0_i32_0 = arith.constant 0 : i32
    %c0_i32_1 = arith.constant 0 : i32
    return %c0_i32, %c0_i32_0 : i32, i32
  }
  func.func @transform_3(%arg0: i32) -> (i32, i32) {
    %c0_i32 = arith.constant 0 : i32
    %c0_i32_0 = arith.constant 0 : i32
    %c0_i32_1 = arith.constant 0 : i32
    return %c0_i32, %c0_i32_0 : i32, i32
  }
  func.func @transform_4(%arg0: i32) -> (i32, i32) {
    %c0_i32 = arith.constant 0 : i32
    %c0_i32_0 = arith.constant 0 : i32
    %c0_i32_1 = arith.constant 0 : i32
    return %c0_i32, %c0_i32_0 : i32, i32
  }
  func.func @transform_5(%arg0: i32) -> (i32, i32) {
    %c0_i32 = arith.constant 0 : i32
    %c0_i32_0 = arith.constant 0 : i32
    %c0_i32_1 = arith.constant 0 : i32
    return %c0_i32, %c0_i32_0 : i32, i32
  }
  func.func @transform_6(%arg0: i32) -> (i32, i32) {
    %c0_i32 = arith.constant 0 : i32
    %c0_i32_0 = arith.constant 0 : i32
    %c0_i32_1 = arith.constant 0 : i32
    return %c0_i32, %c0_i32_0 : i32, i32
  }
  func.func @transform_7(%arg0: i32) -> (i32, i32) {
    %c0_i32 = arith.constant 0 : i32
    %c0_i32_0 = arith.constant 0 : i32
    %c0_i32_1 = arith.constant 0 : i32
    return %c0_i32, %c0_i32_0 : i32, i32
  }
  func.func @transform_8(%arg0: i32) -> (i32, i32) {
    %c0_i32 = arith.constant 0 : i32
    %c0_i32_0 = arith.constant 0 : i32
    %c0_i32_1 = arith.constant 0 : i32
    return %c0_i32, %c0_i32_0 : i32, i32
  }
  func.func @transform_9(%arg0: i32) -> (i32, i32) {
    %c0_i32 = arith.constant 0 : i32
    %c0_i32_0 = arith.constant 0 : i32
    %c0_i32_1 = arith.constant 0 : i32
    return %c0_i32, %c0_i32_0 : i32, i32
  }
  func.func @transform_10(%arg0: i32) -> (i32, i32) {
    %c0_i32 = arith.constant 0 : i32
    %c0_i32_0 = arith.constant 0 : i32
    %c0_i32_1 = arith.constant 0 : i32
    return %c0_i32, %c0_i32_0 : i32, i32
  }
  func.func @transform_11(%arg0: i32) -> (i32, i32) {
    %c0_i32 = arith.constant 0 : i32
    %c0_i32_0 = arith.constant 0 : i32
    %c0_i32_1 = arith.constant 0 : i32
    return %c0_i32, %c0_i32_0 : i32, i32
  }
  func.func @transform_12(%arg0: i32) -> (i32, i32) {
    %c0_i32 = arith.constant 0 : i32
    %c0_i32_0 = arith.constant 0 : i32
    %c0_i32_1 = arith.constant 0 : i32
    return %c0_i32, %c0_i32_0 : i32, i32
  }
  func.func @transform_13(%arg0: i32) -> (i32, i32) {
    %c0_i32 = arith.constant 0 : i32
    %c0_i32_0 = arith.constant 0 : i32
    return %arg0, %c0_i32 : i32, i32
  }
}

</mosaic_0001>

<bundles_post_ra>
// kernel: tpu_custom_call.1
= control target key start
LH: loop header
LB: loop body
LE: loop exit
PB: predicated region body
PF: predicated region fallthrough
CT: control target
= control target key end

     0   :  { %18 = vsyncpa [#allocation3], 0  ;;  %s1750_s0 = inlined_call_operand.hbm [shape: f32[2,256], index: 0, kind: input, shape index: {}]   ;;  %s1751_s1 = inlined_call_operand.hbm [shape: bf16[256,128], index: 1, kind: input, shape index: {}]   ;;  %s1752_s2 = inlined_call_operand.vmem [shape: f32[1,128], index: 2, kind: input, shape index: {}]   ;;  %s1753_s3 = inlined_call_operand.hbm [shape: bf16[128,128], index: 3, kind: input, shape index: {}]   ;;  %s1754_s4 = inlined_call_operand.vmem [shape: f32[1,128], index: 4, kind: input, shape index: {}]   ;;  %s1755_s5 = inlined_call_operand.hbm [shape: bf16[128,128], index: 5, kind: input, shape index: {}]   ;;  %s1756_s6 = inlined_call_operand.vmem [shape: f32[1,128], index: 6, kind: input, shape index: {}]   ;;  %s1757_s7 = inlined_call_operand.hbm [shape: bf16[128,128], index: 7, kind: input, shape index: {}]   ;;  %s1758_s8 = inlined_call_operand.vmem [shape: f32[1,128], index: 8, kind: input, shape index: {}]   ;;  %s1759_s9 = inlined_call_operand.hbm [shape: bf16[128,128], index: 9, kind: input, shape index: {}]   ;;  %s1760_s10 = inlined_call_operand.vmem [shape: f32[1,128], index: 10, kind: input, shape index: {}]   ;;  %s1761_s11 = inlined_call_operand.hbm [shape: bf16[128,128], index: 11, kind: input, shape index: {}]   ;;  %s1762_s12 = inlined_call_operand.vmem [shape: f32[1,128], index: 12, kind: input, shape index: {}]   ;;  %s1763_s13 = inlined_call_operand.hbm [shape: bf16[2,128], index: 13, kind: output, shape index: {}]  }
   0x1   :  { %19 = vsyncpa [#allocation6], 0 }
   0x2   :  { %20 = vsyncpa [#allocation9], 0 }
   0x3   :  { %21 = vsyncpa [#allocation12], 0 }
   0x4   :  { %22 = vsyncpa [#allocation4], 0 }
   0x5   :  { %27 = vsyncadd [#allocation3], 448  ;;  %s1549_s25 = smov [#allocation5]   ;;  %s1550_s27 = smov [#allocation8]  }
   0x6   :  { %s40_s26 = sshll.u32 %s1549_s25, 4  ;;  %s68_s28 = sshll.u32 %s1550_s27, 4  ;;  %s41_s26 = int_to_ptr.vmem [resolvable:$true] %s40_s26  ;;  %s69_s28 = int_to_ptr.vmem [resolvable:$true] %s68_s28 }
   0x7   :  { %s1387_s29 = scalar_lea.vmem %s41_s26, 2048  ;;  %p1392_p1 = scmp.lt.s32.totalorder %s41_s26, %s41_s26 }
   0x8   :  { %p1388_p0 = scmp.ne.s32.totalorder %s41_s26, %s1387_s29  ;;  %p1393_p2 = scmp.lt.s32.totalorder %s1387_s29, %s1387_s29 }
   0xa   :  { %p1394_p3 = por %p1393_p2, %p1392_p1 }
   0xc   :  { %p1395_p4 = pnand %p1394_p3, %p1388_p0 }
   0xe   :  { %1398 = shalt.err (!%p1395_p4)
}
   0xf   :  { %s1551_s30 = smov 64   ;;  %s1552_s14 = smov 4  }
  0x10   :  { %46 = dma.hbm_to_vmem [thread:$0]  %s1751_s1, 2048, %s41_s26, [#allocation6], %s1551_s30, %s1551_s30, %s1552_s14  }
  0x11   :  { %s1407_s17 = scalar_lea.vmem %s69_s28, 1024  ;;  %p1412_p6 = scmp.lt.s32.totalorder %s69_s28, %s69_s28 }
  0x12   :  { %p1408_p5 = scmp.ne.s32.totalorder %s69_s28, %s1407_s17  ;;  %p1413_p7 = scmp.lt.s32.totalorder %s1407_s17, %s1407_s17 }
  0x14   :  { %p1414_p8 = por %p1413_p7, %p1412_p6 }
  0x16   :  { %p1415_p9 = pnand %p1414_p8, %p1408_p5 }
  0x18   :  { %1418 = shalt.err (!%p1415_p9)
}
  0x19   :  { %74 = dma.hbm_to_vmem [thread:$0]  %s1755_s5, 1024, %s69_s28, [#allocation9], %s1551_s30, %s1551_s30, %s1552_s14  }
  0x1a   :  { %s1553_s20 = smov [#allocation11]   ;;  %s1554_s22 = smov [#allocation2]  }
  0x1b   :  { %s96_s21 = sshll.u32 %s1553_s20, 4  ;;  %s28_s23 = sshll.u32 %s1554_s22, 4  ;;  %s97_s21 = int_to_ptr.vmem [resolvable:$true] %s96_s21  ;;  %s29_s23 = int_to_ptr.vmem [resolvable:$true] %s28_s23 }
  0x1c   :  { %s1427_s1 = scalar_lea.vmem %s97_s21, 1024  ;;  %p1432_p11 = scmp.lt.s32.totalorder %s97_s21, %s97_s21 }
  0x1d   :  { %p1428_p10 = scmp.ne.s32.totalorder %s97_s21, %s1427_s1  ;;  %p1433_p12 = scmp.lt.s32.totalorder %s1427_s1, %s1427_s1 }
  0x1f   :  { %p1434_p13 = por %p1433_p12, %p1432_p11 }
  0x21   :  { %p1435_p0 = pnand %p1434_p13, %p1428_p10 }
  0x23   :  { %1438 = shalt.err (!%p1435_p0)
}
  0x24   :  { %102 = dma.hbm_to_vmem [thread:$0]  %s1759_s9, 1024, %s97_s21, [#allocation12], %s1551_s30, %s1551_s30, %s1552_s14  }
  0x25   :  { %s1447_s5 = scalar_lea.vmem %s29_s23, 64  ;;  %s1451_s26 = scalar_lea.vmem %s29_s23, 512 }
  0x26   :  { %p1448_p1 = scmp.ne.s32.totalorder %s29_s23, %s1447_s5  ;;  %p1452_p2 = scmp.lt.s32.totalorder %s29_s23, %s29_s23 }
  0x27   :  { %p1453_p3 = scmp.lt.s32.totalorder %s1451_s26, %s1447_s5 }
  0x29   :  { %p1454_p4 = por %p1453_p3, %p1452_p2 }
  0x2b   :  { %p1455_p5 = pnand %p1454_p4, %p1448_p1 }
  0x2d   :  { %1458 = shalt.err (!%p1455_p5)
}
  0x2e   :  { %34 = dma.hbm_to_vmem [thread:$0]  %s1750_s0, 64, %s29_s23, [#allocation3], %s1551_s30, %s1551_s30, %s1552_s14  }
  0x2f   :  { %s1555_s29 = smov [#allocation7]   ;;  %s1556_s16 = smov [#allocation10]  }
  0x30   :  { %s54_s15 = sshll.u32 %s1555_s29, 4  ;;  %s82_s17 = sshll.u32 %s1556_s16, 4  ;;  %s55_s15 = int_to_ptr.vmem [resolvable:$true] %s54_s15  ;;  %s83_s17 = int_to_ptr.vmem [resolvable:$true] %s82_s17 }
  0x31   :  { %s1467_s9 = scalar_lea.vmem %s55_s15, 1024  ;;  %p1472_p7 = scmp.lt.s32.totalorder %s55_s15, %s55_s15 }
  0x32   :  { %p1468_p6 = scmp.ne.s32.totalorder %s55_s15, %s1467_s9  ;;  %p1473_p8 = scmp.lt.s32.totalorder %s1467_s9, %s1467_s9 }
  0x34   :  { %p1474_p9 = por %p1473_p8, %p1472_p7 }
  0x36   :  { %p1475_p10 = pnand %p1474_p9, %p1468_p6 }
  0x38   :  { %1478 = shalt.err (!%p1475_p10)
}
  0x39   :  { %60 = dma.hbm_to_vmem [thread:$0]  %s1753_s3, 1024, %s55_s15, [#allocation6], %s1551_s30, %s1551_s30, %s1552_s14  }
  0x3a   :  { %s1487_s0 = scalar_lea.vmem %s83_s17, 1024  ;;  %p1492_p12 = scmp.lt.s32.totalorder %s83_s17, %s83_s17 }
  0x3b   :  { %p1488_p11 = scmp.ne.s32.totalorder %s83_s17, %s1487_s0  ;;  %p1493_p13 = scmp.lt.s32.totalorder %s1487_s0, %s1487_s0 }
  0x3d   :  { %p1494_p0 = por %p1493_p13, %p1492_p12 }
  0x3f   :  { %p1495_p1 = pnand %p1494_p0, %p1488_p11 }
  0x41   :  { %1498 = shalt.err (!%p1495_p1)
}
  0x42   :  { %88 = dma.hbm_to_vmem [thread:$0]  %s1757_s7, 1024, %s83_s17, [#allocation9], %s1551_s30, %s1551_s30, %s1552_s14  }
  0x43   :  { %s1557_s22 = smov [#allocation13]  }
  0x44   :  { %s110_s23 = sshll.u32 %s1557_s22, 4  ;;  %s111_s23 = int_to_ptr.vmem [resolvable:$true] %s110_s23 }
  0x45   :  { %s1507_s1 = scalar_lea.vmem %s111_s23, 1024  ;;  %p1512_p3 = scmp.lt.s32.totalorder %s111_s23, %s111_s23 }
  0x46   :  { %p1508_p2 = scmp.ne.s32.totalorder %s111_s23, %s1507_s1  ;;  %p1513_p4 = scmp.lt.s32.totalorder %s1507_s1, %s1507_s1 }
  0x48   :  { %p1514_p5 = por %p1513_p4, %p1512_p3 }
  0x4a   :  { %p1515_p6 = pnand %p1514_p5, %p1508_p2 }
  0x4c   :  { %1518 = shalt.err (!%p1515_p6)
}
  0x4d   :  { %116 = dma.hbm_to_vmem [thread:$0]  %s1761_s11, 1024, %s111_s23, [#allocation12], %s1551_s30, %s1551_s30, %s1552_s14  }
  0x4e   :  { %1539 = dma.done.wait [#allocation3], 512  }
  0x4f   :  { %1540 = vsyncadd [#allocation3], 4294966784 }
  0x50   :  { %1541 = dma.done.wait [#allocation6], 3072  }
  0x51   :  { %1542 = vsyncadd [#allocation6], 4294964224 }
  0x52   :  { %1543 = dma.done.wait [#allocation9], 2048  }
  0x53   :  { %1544 = vsyncadd [#allocation9], 4294965248 }
  0x54   :  { %1545 = dma.done.wait [#allocation12], 2048  }
  0x55   :  { %1546 = vsyncadd [#allocation12], 4294965248  ;;  %v1558_v0 = vmov 0.0   ;;  %v1307_v1 = vld [vmem:[#allocation5 + $0x78] sm:$0xff]   ;;  %v1309_v3 = vld [vmem:[#allocation5 + $0x70] sm:$0xff]   ;;  %v162_v8 = vlaneseq  ;;  %vm1559_vm0 = vmmov 0  }
  0x56   :  { %1191 = vmatprep.subr.bf16.mxu1 %v1558_v0  ;;  %v1308_v2 = vld [vmem:[#allocation5 + $0x38] sm:$0xff]   ;;  %1124 = vmatprep.subr.bf16.mxu0 %v1307_v1  ;;  %v1310_v4 = vld [vmem:[#allocation5 + $0x30] sm:$0xff]   ;;  %v1311_v5 = vld [vmem:[#allocation5 + $0x68] sm:$0xff]  }
  0x57   :  { %1125 = vmatpush3.bf16.msra.mxu0 %v1308_v2  ;;  %v1312_v6 = vld [vmem:[#allocation5 + $0x28] sm:$0xff]   ;;  %v1313_v7 = vld [vmem:[#allocation5 + $0x60] sm:$0xff]   ;;  %v1315_v10 = vld [vmem:[#allocation5 + $0x58] sm:$0xff]   ;;  %v1677_v11 = vshrl.u32 %v162_v8, 7  ;;  %1207 = vmatprep.mubr.msk.bf16.mxu1 %vm1559_vm0, %v1558_v0 }
  0x58   :  { %1126 = vmatprep.subr.bf16.mxu0 %v1309_v3  ;;  %v1314_v9 = vld [vmem:[#allocation5 + $0x20] sm:$0xff]   ;;  %v1316_v12 = vld [vmem:[#allocation5 + $0x18] sm:$0xff]   ;;  %v1317_v13 = vld [vmem:[#allocation5 + $0x50] sm:$0xff]  }
  0x59   :  { %v1318_v14 = vld [vmem:[#allocation5 + $0x10] sm:$0xff]   ;;  %v1319_v15 = vld [vmem:[#allocation5 + $0x48] sm:$0xff]   ;;  %v1375_v16 = vld.sshfl [vmem:[#allocation2] sm:$0xff pattern:$0x76325410] }
  0x5a   :  { %v1376_v17 = vld.sshfl [vmem:[#allocation2 + $0x8] sm:$0xff pattern:$0x76325410]  ;;  %v1377_v18 = vld.sshfl [vmem:[#allocation2 + $0x10] sm:$0xff pattern:$0x76325410] }
  0x5b   :  { %1127 = vmatpush3.bf16.msra.mxu0 %v1310_v4  ;;  %v1378_v19 = vld.sshfl [vmem:[#allocation2 + $0x18] sm:$0xff pattern:$0x76325410]  ;;  %v1320_v21 = vld [vmem:[#allocation5 + $0x8] sm:$0xff]   ;;  %v1328_v22 = vld [vmem:[#allocation7 + $0x30] sm:$0xff]   ;;  %v174_v24 = vcombine.high %v1375_v16, %v1376_v17  ;;  %v173_v29 = vcombine.low %v1375_v16, %v1376_v17 }
  0x5c   :  { %1128 = vmatprep.subr.bf16.mxu0 %v1311_v5  ;;  %v1327_v20 = vld [vmem:[#allocation7 + $0x38] sm:$0xff]   ;;  %v1321_v23 = vld [vmem:[#allocation5 + $0x40] sm:$0xff]   ;;  %v192_v25 = vcombine.high %v1377_v18, %v1378_v19  ;;  %v1329_v26 = vld [vmem:[#allocation7 + $0x28] sm:$0xff]   ;;  %v191_v30 = vcombine.low %v1377_v18, %v1378_v19 }
  0x5d   :  { %1192 = vmatpush3.bf16.msra.mxu1 %v1327_v20  ;;  %v1322_v27 = vld [vmem:[#allocation5] sm:$0xff]   ;;  %v1331_v33 = vld [vmem:[#allocation7 + $0x18] sm:$0xff]   ;;  %v1332_v34 = vld [vmem:[#allocation7 + $0x10] sm:$0xff]  }
  0x5e   :  { %1193 = vmatprep.subr.bf16.mxu1 %v1558_v0  ;;  %v198_v28 = vpack.c.bf16 %v192_v25, %v174_v24  ;;  %v1330_v31 = vld [vmem:[#allocation7 + $0x20] sm:$0xff]   ;;  %v197_v32 = vpack.c.bf16 %v191_v30, %v173_v29  ;;  %v1333_v35 = vld [vmem:[#allocation7 + $0x8] sm:$0xff]   ;;  %v1335_v37 = vld [vmem:[#allocation8 + $0x38] sm:$0xff]  }
  0x5f   :  { %1129 = vmatpush3.bf16.msra.mxu0 %v1312_v6  ;;  %v1334_v36 = vld [vmem:[#allocation7] sm:$0xff]   ;;  %v1336_v38 = vld [vmem:[#allocation8 + $0x30] sm:$0xff]   ;;  %v1337_v39 = vld [vmem:[#allocation8 + $0x28] sm:$0xff]  }
  0x60   :  { %1130 = vmatprep.subr.bf16.mxu0 %v1313_v7  ;;  %366 = vmatprep.mubr.bf16.mxu0 %v198_v28  ;;  %v1338_v40 = vld [vmem:[#allocation8 + $0x20] sm:$0xff]   ;;  %v1339_v41 = vld [vmem:[#allocation8 + $0x18] sm:$0xff]   ;;  %v1340_v54 = vld [vmem:[#allocation8 + $0x10] sm:$0xff]  }
  0x61   :  { %1194 = vmatpush3.bf16.msra.mxu1 %v1328_v22  ;;  %v1057_v45 = vld [vmem:[%s1752_s2] ss:$0 sm:$0xff]  ;;  %v1341_v55 = vld [vmem:[#allocation8 + $0x8] sm:$0xff]   ;;  %v1343_v57 = vld [vmem:[#allocation10 + $0x38] sm:$0xff]  }
  0x62   :  { %1195 = vmatprep.subr.bf16.mxu1 %v1558_v0  ;;  %v1342_v56 = vld [vmem:[#allocation8] sm:$0xff]   ;;  %v1344_v58 = vld [vmem:[#allocation10 + $0x30] sm:$0xff]   ;;  %v1345_v59 = vld [vmem:[#allocation10 + $0x28] sm:$0xff]  }
  0x63   :  { %1131 = vmatpush3.bf16.msra.mxu0 %v1314_v9  ;;  %v1346_v60 = vld [vmem:[#allocation10 + $0x20] sm:$0xff]   ;;  %v1347_v61 = vld [vmem:[#allocation10 + $0x18] sm:$0xff]   ;;  %v1348_v9 = vld [vmem:[#allocation10 + $0x10] sm:$0xff]  }
  0x64   :  { %1132 = vmatprep.subr.bf16.mxu0 %v1315_v10  ;;  %v1074_v62 = vld [vmem:[%s1754_s4] ss:$0 sm:$0xff]  ;;  %v1349_v10 = vld [vmem:[#allocation10 + $0x8] sm:$0xff]   ;;  %v1355_v17 = vld [vmem:[#allocation11 + $0x18] sm:$0xff]  }
  0x65   :  { %1196 = vmatpush3.bf16.msra.mxu1 %v1329_v26  ;;  %v1354_v16 = vld [vmem:[#allocation11 + $0x20] sm:$0xff]   ;;  %v1356_v28 = vld [vmem:[#allocation11 + $0x10] sm:$0xff]   ;;  %v1357_v29 = vld [vmem:[#allocation11 + $0x8] sm:$0xff]  }
  0x66   :  { %1197 = vmatprep.subr.bf16.mxu1 %v1558_v0  ;;  %v1083_v18 = vld [vmem:[%s1756_s6] ss:$0 sm:$0xff] }
  0x67   :  { %1133 = vmatpush3.bf16.msra.mxu0 %v1316_v12  ;;  %v1350_v12 = vld [vmem:[#allocation10] sm:$0xff]  }
  0x68   :  { %1134 = vmatprep.subr.bf16.mxu0 %v1317_v13  ;;  %v1351_v13 = vld [vmem:[#allocation11 + $0x38] sm:$0xff]   ;;  %v1358_v30 = vld [vmem:[#allocation11] sm:$0xff]  }
  0x69   :  { %1198 = vmatpush3.bf16.msra.mxu1 %v1330_v31  ;;  %v1359_v31 = vld [vmem:[#allocation13 + $0x38] sm:$0xff]  }
  0x6a   :  { %1199 = vmatprep.subr.bf16.mxu1 %v1558_v0 }
  0x6b   :  { %1135 = vmatpush3.bf16.msra.mxu0 %v1318_v14  ;;  %v1352_v14 = vld [vmem:[#allocation11 + $0x30] sm:$0xff]  }
  0x6c   :  { %1136 = vmatprep.subr.bf16.mxu0 %v1319_v15  ;;  %v1353_v15 = vld [vmem:[#allocation11 + $0x28] sm:$0xff]  }
  0x6d   :  { %1200 = vmatpush3.bf16.msra.mxu1 %v1331_v33  ;;  %v1361_v33 = vld [vmem:[#allocation13 + $0x28] sm:$0xff]  }
  0x6e   :  { %1201 = vmatprep.subr.bf16.mxu1 %v1558_v0 }
  0x6f   :  { %1137 = vmatpush3.bf16.msra.mxu0 %v1320_v21 }
  0x70   :  { %1138 = vmatprep.subr.bf16.mxu0 %v1321_v23 }
  0x71   :  { %1202 = vmatpush3.bf16.msra.mxu1 %v1332_v34  ;;  %v1362_v34 = vld [vmem:[#allocation13 + $0x20] sm:$0xff]  }
  0x72   :  { %1203 = vmatprep.subr.bf16.mxu1 %v1558_v0 }
  0x73   :  { %1139 = vmatpush3.bf16.msra.mxu0 %v1322_v27 }
  0x74   :  { %1211 = vmatprep.subr.bf16.mxu0 %v1558_v0 }
  0x75   :  { %1204 = vmatpush3.bf16.msra.mxu1 %v1333_v35  ;;  %v1363_v35 = vld [vmem:[#allocation13 + $0x18] sm:$0xff]  }
  0x76   :  { %367 = vmatmul.mubr.bf16.vlgmr.msra.gmra.mxu0 %v197_v32  ;;  %1205 = vmatprep.subr.bf16.mxu1 %v1558_v0  ;;  %v1360_v32 = vld [vmem:[#allocation13 + $0x30] sm:$0xff]  }
  0x77   :  { %1227 = vmatprep.mubr.msk.bf16.mxu0 %vm1559_vm0, %v1558_v0  ;;  %1212 = vmatpush3.bf16.msra.mxu0 %v1335_v37 }
  0x78   :  { %1213 = vmatprep.subr.bf16.mxu0 %v1558_v0 }
  0x79   :  { %1206 = vmatpush3.bf16.msra.mxu1 %v1334_v36  ;;  %v1092_v36 = vld [vmem:[%s1758_s8] ss:$0 sm:$0xff] }
  0x7a   :  { %1231 = vmatprep.subr.bf16.mxu1 %v1558_v0 }
  0x7b   :  { %1214 = vmatpush3.bf16.msra.mxu0 %v1336_v38 }
  0x7c   :  { %1215 = vmatprep.subr.bf16.mxu0 %v1558_v0 }
  0x7f   :  { %1216 = vmatpush3.bf16.msra.mxu0 %v1337_v39 }
  0x80   :  { %1217 = vmatprep.subr.bf16.mxu0 %v1558_v0 }
  0x83   :  { %1218 = vmatpush3.bf16.msra.mxu0 %v1338_v40 }
  0x84   :  { %1219 = vmatprep.subr.bf16.mxu0 %v1558_v0 }
  0x87   :  { %1220 = vmatpush3.bf16.msra.mxu0 %v1339_v41 }
  0x88   :  { %1221 = vmatprep.subr.bf16.mxu0 %v1558_v0 }
  0x8b   :  { %1222 = vmatpush3.bf16.msra.mxu0 %v1340_v54 }
  0x8c   :  { %1223 = vmatprep.subr.bf16.mxu0 %v1558_v0 }
  0x8f   :  { %1224 = vmatpush3.bf16.msra.mxu0 %v1341_v55 }
  0x90   :  { %1225 = vmatprep.subr.bf16.mxu0 %v1558_v0 }
  0x93   :  { %1226 = vmatpush3.bf16.msra.mxu0 %v1342_v56 }
  0x94   :  { %1251 = vmatprep.subr.bf16.mxu0 %v1558_v0 }
 0x136   :  { %v1140_v42 = vpop.f32.mrf.mxu0 }
 0x138   :  { %v1141_v43 = vpop.f32.mrf.mxu0 }
 0x139   :  { %v1142_v44 = vadd.f32 %v1141_v43, %v1140_v42 }
 0x13a   :  { %v1143_v46 = vpop.f32.mrf.mxu0 }
 0x13b   :  { %v369_v48 = vadd.f32 %v1142_v44, %v1057_v45 }
 0x13c   :  { %v1144_v47 = vpop.f32.mrf.mxu0 }
 0x13d   :  { %v1145_v49 = vadd.f32 %v1144_v47, %v1143_v46  ;;  %v375_v51 = vmax.f32 %v369_v48, 0.0  ;;  %v1364_v46 = vld [vmem:[#allocation13 + $0x10] sm:$0xff]   ;;  %v1365_v47 = vld [vmem:[#allocation13 + $0x8] sm:$0xff]   ;;  %v1366_v48 = vld [vmem:[#allocation13] sm:$0xff]  }
 0x13f   :  { %v372_v50 = vadd.f32 %v1145_v49, %v1057_v45  ;;  %v1101_v49 = vld [vmem:[%s1760_s10] ss:$0 sm:$0xff] }
 0x141   :  { %v376_v52 = vmax.f32 %v372_v50, 0.0 }
 0x143   :  { %v377_v53 = vpack.c.bf16 %v376_v52, %v375_v51 }
 0x145   :  { %1208 = vmatmul.mubr.bf16.vlgmr.msra.gmra.mxu1 %v377_v53 }
 0x146   :  { %1247 = vmatprep.mubr.msk.bf16.mxu1 %vm1559_vm0, %v1558_v0  ;;  %1232 = vmatpush3.bf16.msra.mxu1 %v1343_v57 }
 0x147   :  { %1233 = vmatprep.subr.bf16.mxu1 %v1558_v0 }
 0x14a   :  { %1234 = vmatpush3.bf16.msra.mxu1 %v1344_v58 }
 0x14b   :  { %1235 = vmatprep.subr.bf16.mxu1 %v1558_v0 }
 0x14e   :  { %1236 = vmatpush3.bf16.msra.mxu1 %v1345_v59 }
 0x14f   :  { %1237 = vmatprep.subr.bf16.mxu1 %v1558_v0 }
 0x152   :  { %1238 = vmatpush3.bf16.msra.mxu1 %v1346_v60 }
 0x153   :  { %1239 = vmatprep.subr.bf16.mxu1 %v1558_v0 }
 0x156   :  { %1240 = vmatpush3.bf16.msra.mxu1 %v1347_v61 }
 0x157   :  { %1241 = vmatprep.subr.bf16.mxu1 %v1558_v0 }
 0x15a   :  { %1242 = vmatpush3.bf16.msra.mxu1 %v1348_v9 }
 0x15b   :  { %1243 = vmatprep.subr.bf16.mxu1 %v1558_v0 }
 0x15e   :  { %1244 = vmatpush3.bf16.msra.mxu1 %v1349_v10 }
 0x15f   :  { %1245 = vmatprep.subr.bf16.mxu1 %v1558_v0 }
 0x162   :  { %1246 = vmatpush3.bf16.msra.mxu1 %v1350_v12 }
 0x163   :  { %1271 = vmatprep.subr.bf16.mxu1 %v1558_v0 }
 0x205   :  { %v483_v63 = vpop.f32.mrf.mxu1 }
 0x206   :  { %v484_v2 = vadd.f32 %v1074_v62, %v483_v63 }
 0x207   :  { %v1209_v1 = vpop.f32.mrf.mxu1 }
 0x208   :  { %v490_v6 = vmax.f32 %v484_v2, 0.0 }
 0x209   :  { %v486_v3 = vpop.f32.mrf.mxu1 }
 0x20a   :  { %v487_v4 = vadd.f32 %v1074_v62, %v486_v3 }
 0x20b   :  { %v1210_v5 = vpop.f32.mrf.mxu1 }
 0x20c   :  { %v491_v7 = vmax.f32 %v487_v4, 0.0 }
 0x20e   :  { %v492_v8 = vpack.c.bf16 %v491_v7, %v490_v6 }
 0x210   :  { %1228 = vmatmul.mubr.bf16.vlgmr.msra.gmra.mxu0 %v492_v8 }
 0x211   :  { %1267 = vmatprep.mubr.msk.bf16.mxu0 %vm1559_vm0, %v1558_v0  ;;  %1252 = vmatpush3.bf16.msra.mxu0 %v1351_v13  ;;  %v1560_v13 = vmov 1966171168  }
 0x212   :  { %1253 = vmatprep.subr.bf16.mxu0 %v1558_v0 }
 0x215   :  { %1254 = vmatpush3.bf16.msra.mxu0 %v1352_v14  ;;  %v974_v14 = vunpack.c.l.s4 %v1560_v13 }
 0x216   :  { %1255 = vmatprep.subr.bf16.mxu0 %v1558_v0 }
 0x219   :  { %1256 = vmatpush3.bf16.msra.mxu0 %v1353_v15 }
 0x21a   :  { %1257 = vmatprep.subr.bf16.mxu0 %v1558_v0 }
 0x21d   :  { %1258 = vmatpush3.bf16.msra.mxu0 %v1354_v16  ;;  %v975_v16 = vunpack.c.0.s8 %v974_v14 }
 0x21e   :  { %1259 = vmatprep.subr.bf16.mxu0 %v1558_v0 }
 0x221   :  { %1260 = vmatpush3.bf16.msra.mxu0 %v1355_v17 }
 0x222   :  { %1261 = vmatprep.subr.bf16.mxu0 %v1558_v0 }
 0x225   :  { %1262 = vmatpush3.bf16.msra.mxu0 %v1356_v28 }
 0x226   :  { %1263 = vmatprep.subr.bf16.mxu0 %v1558_v0 }
 0x229   :  { %1264 = vmatpush3.bf16.msra.mxu0 %v1357_v29 }
 0x22a   :  { %1265 = vmatprep.subr.bf16.mxu0 %v1558_v0 }
 0x22d   :  { %1266 = vmatpush3.bf16.msra.mxu0 %v1358_v30 }
 0x2d0   :  { %v598_v19 = vpop.f32.mrf.mxu0 }
 0x2d1   :  { %v599_v21 = vadd.f32 %v1083_v18, %v598_v19 }
 0x2d2   :  { %v1229_v20 = vpop.f32.mrf.mxu0 }
 0x2d3   :  { %v605_v25 = vmax.f32 %v599_v21, 0.0  ;;  %v978_v20 = vsub.s32 %v975_v16, %v1677_v11 }
 0x2d4   :  { %v601_v22 = vpop.f32.mrf.mxu0 }
 0x2d5   :  { %v602_v23 = vadd.f32 %v1083_v18, %v601_v22 }
 0x2d6   :  { %v1230_v24 = vpop.f32.mrf.mxu0 }
 0x2d7   :  { %v606_v26 = vmax.f32 %v602_v23, 0.0 }
 0x2d9   :  { %v607_v27 = vpack.c.bf16 %v606_v26, %v605_v25 }
 0x2db   :  { %1248 = vmatmul.mubr.bf16.vlgmr.msra.gmra.mxu1 %v607_v27 }
 0x2dc   :  { %1287 = vmatprep.mubr.msk.bf16.mxu1 %vm1559_vm0, %v1558_v0  ;;  %1272 = vmatpush3.bf16.msra.mxu1 %v1359_v31 }
 0x2dd   :  { %1273 = vmatprep.subr.bf16.mxu1 %v1558_v0 }
 0x2e0   :  { %1274 = vmatpush3.bf16.msra.mxu1 %v1360_v32 }
 0x2e1   :  { %1275 = vmatprep.subr.bf16.mxu1 %v1558_v0 }
 0x2e4   :  { %1276 = vmatpush3.bf16.msra.mxu1 %v1361_v33 }
 0x2e5   :  { %1277 = vmatprep.subr.bf16.mxu1 %v1558_v0 }
 0x2e8   :  { %1278 = vmatpush3.bf16.msra.mxu1 %v1362_v34 }
 0x2e9   :  { %1279 = vmatprep.subr.bf16.mxu1 %v1558_v0 }
 0x2ec   :  { %1280 = vmatpush3.bf16.msra.mxu1 %v1363_v35 }
 0x2ed   :  { %1281 = vmatprep.subr.bf16.mxu1 %v1558_v0 }
 0x2f0   :  { %1282 = vmatpush3.bf16.msra.mxu1 %v1364_v46 }
 0x2f1   :  { %1283 = vmatprep.subr.bf16.mxu1 %v1558_v0 }
 0x2f4   :  { %1284 = vmatpush3.bf16.msra.mxu1 %v1365_v47 }
 0x2f5   :  { %1285 = vmatprep.subr.bf16.mxu1 %v1558_v0  ;;  %v1110_v0 = vld [vmem:[%s1762_s12] ss:$0 sm:$0xff] }
 0x2f8   :  { %1286 = vmatpush3.bf16.msra.mxu1 %v1366_v48 }
 0x39b   :  { %v713_v37 = vpop.f32.mrf.mxu1 }
 0x39c   :  { %v714_v39 = vadd.f32 %v1092_v36, %v713_v37 }
 0x39d   :  { %v1249_v38 = vpop.f32.mrf.mxu1 }
 0x39e   :  { %v720_v43 = vmax.f32 %v714_v39, 0.0 }
 0x39f   :  { %v716_v40 = vpop.f32.mrf.mxu1 }
 0x3a0   :  { %v717_v41 = vadd.f32 %v1092_v36, %v716_v40 }
 0x3a1   :  { %v1250_v42 = vpop.f32.mrf.mxu1 }
 0x3a2   :  { %v721_v44 = vmax.f32 %v717_v41, 0.0 }
 0x3a4   :  { %v722_v45 = vpack.c.bf16 %v721_v44, %v720_v43 }
 0x3a6   :  { %1268 = vmatmul.mubr.bf16.vlgmr.msra.gmra.mxu0 %v722_v45 }
 0x466   :  { %v828_v50 = vpop.f32.mrf.mxu0 }
 0x467   :  { %v829_v52 = vadd.f32 %v1101_v49, %v828_v50 }
 0x468   :  { %v1269_v51 = vpop.f32.mrf.mxu0 }
 0x469   :  { %v835_v56 = vmax.f32 %v829_v52, 0.0 }
 0x46a   :  { %v831_v53 = vpop.f32.mrf.mxu0 }
 0x46b   :  { %v832_v54 = vadd.f32 %v1101_v49, %v831_v53 }
 0x46c   :  { %v1270_v55 = vpop.f32.mrf.mxu0 }
 0x46d   :  { %v836_v57 = vmax.f32 %v832_v54, 0.0 }
 0x46f   :  { %v837_v58 = vpack.c.bf16 %v836_v57, %v835_v56 }
 0x471   :  { %1288 = vmatmul.mubr.bf16.vlgmr.msra.gmra.mxu1 %v837_v58 }
 0x531   :  { %v943_v59 = vpop.f32.mrf.mxu1 }
 0x532   :  { %v944_v60 = vadd.f32 %v1110_v0, %v943_v59 }
 0x533   :  { %v1289_v61 = vpop.f32.mrf.mxu1 }
 0x534   :  { %950 = vmax.xlane.f32.xlu0 %v944_v60 }
 0x535   :  { %v946_v62 = vpop.f32.mrf.mxu1 }
 0x536   :  { %v947_v63 = vadd.f32 %v1110_v0, %v946_v62 }
 0x537   :  { %v1290_v1 = vpop.f32.mrf.mxu1 }
 0x538   :  { %952 = vmax.xlane.f32.xlu0 %v947_v63 }
 0x5bd   :  { %v951_v2 = vpop.xlane.xlu0 %950 }
 0x5be   :  { %v954_v3 = vsub.f32 %v944_v60, %v951_v2 }
 0x5c0   :  { %v956_v4 = vmul.f32 1.442695, %v954_v3 }
 0x5c1   :  { %v953_v5 = vpop.xlane.xlu0 %952 }
 0x5c2   :  { %v955_v6 = vsub.f32 %v947_v63, %v953_v5  ;;  %1367 = vpow2.f32 %v956_v4 }
 0x5c4   :  { %v958_v7 = vmul.f32 1.442695, %v955_v6 }
 0x5c6   :  { %1369 = vpow2.f32 %v958_v7 }
 0x5cf   :  { %v1368_v8 = vpop.eup %1367 }
 0x5d0   :  { %960 = vadd.xlane.f32.xlu1 %v1368_v8 }
 0x5d3   :  { %v1370_v9 = vpop.eup %1369 }
 0x5d4   :  { %962 = vadd.xlane.f32.xlu1 %v1370_v9 }
 0x659   :  { %v961_v10 = vpop.xlane.xlu1 %960 }
 0x65a   :  { %1371 = vlog2.f32 %v961_v10 }
 0x65d   :  { %v963_v12 = vpop.xlane.xlu1 %962 }
 0x65e   :  { %1373 = vlog2.f32 %v963_v12 }
 0x667   :  { %v1372_v15 = vpop.eup %1371 }
 0x668   :  { %v965_v17 = vmul.f32 0.6931472, %v1372_v15 }
 0x66a   :  { %v968_v21 = vsub.f32 %v954_v3, %v965_v17 }
 0x66b   :  { %v1374_v18 = vpop.eup %1373 }
 0x66c   :  { %v967_v19 = vmul.f32 0.6931472, %v1374_v18 }
 0x66e   :  { %v969_v22 = vsub.f32 %v955_v6, %v967_v19 }
 0x670   :  { %v970_v23 = vpack.c.bf16 %v969_v22, %v968_v21  ;;  %v1119_v24 = vpack.c.bf16 %v969_v22, %v969_v22 }
 0x672   :  { %v979_v25 = vrot.slane %v970_v23, %v978_v20  ;;  %v986_v26 = vrot.slane %v1119_v24, %v978_v20 }
 0x674   :  { %v987_v27 = vcombine.high %v979_v25, %v979_v25  ;;  %v988_v28 = vcombine.high %v986_v26, %v986_v26  ;;  %v995_v29 = vrot.slane %v979_v25, %v978_v20  ;;  %v1002_v30 = vrot.slane %v986_v26, %v978_v20  ;;  %1120 = vst.sshfl [vmem:[#allocation14] sm:$0x1 pattern:$0x73625140] %v979_v25 }
 0x675   :  { %1122 = vst.sshfl [vmem:[#allocation14 + $0x4] sm:$0x1 pattern:$0x73625140] %v986_v26 }
 0x676   :  { %v1009_v31 = vrot.slane %v987_v27, %v978_v20  ;;  %v1016_v32 = vrot.slane %v988_v28, %v978_v20  ;;  %v1017_v33 = vcombine.high %v995_v29, %v995_v29  ;;  %v1018_v34 = vcombine.high %v1002_v30, %v1002_v30  ;;  %1121 = vst.sshfl [vmem:[#allocation14 + $0x1] sm:$0x1 pattern:$0x73625140] %v987_v27 }
 0x677   :  { %1123 = vst.sshfl [vmem:[#allocation14 + $0x5] sm:$0x1 pattern:$0x73625140] %v988_v28 }
 0x678   :  { %v1019_v35 = vcombine.high %v1009_v31, %v1009_v31  ;;  %v1020_v11 = vcombine.high %v1016_v32, %v1016_v32  ;;  %1031 = vst [vmem:[#allocation14 + $0x2] sm:$0x1] %v1017_v33  ;;  %1035 = vst [vmem:[#allocation14 + $0x6] sm:$0x1] %v1018_v34 }
 0x67a   :  { %1032 = vst [vmem:[#allocation14 + $0x3] sm:$0x1] %v1019_v35  ;;  %1036 = vst [vmem:[#allocation14 + $0x7] sm:$0x1] %v1020_v11 }
 0x67b   :  { %1041 = vsyncadd [#allocation4], 112  ;;  %s1561_s10 = smov [#allocation14]  }
 0x67c   :  { %s1042_s12 = sshll.u32 %s1561_s10, 4  ;;  %s1043_s12 = int_to_ptr.vmem [resolvable:$true] %s1042_s12 }
 0x67d   :  { %s1519_s28 = scalar_lea.vmem %s1043_s12, 16  ;;  %s1523_s29 = scalar_lea.vmem %s1043_s12, 128 }
 0x67e   :  { %p1520_p7 = scmp.ne.s32.totalorder %s1043_s12, %s1519_s28  ;;  %p1524_p8 = scmp.lt.s32.totalorder %s1043_s12, %s1043_s12 }
 0x67f   :  { %p1525_p9 = scmp.lt.s32.totalorder %s1523_s29, %s1519_s28 }
 0x681   :  { %p1526_p10 = por %p1525_p9, %p1524_p8 }
 0x683   :  { %p1527_p11 = pnand %p1526_p10, %p1520_p7 }
 0x685   :  { %1530 = shalt.err (!%p1527_p11)
}
 0x686   :  { %s1562_s15 = smov 16   ;;  %s1563_s16 = smov 1  }
 0x687   :  { %1048 = dma.vmem_to_hbm [thread:$0]  %s1043_s12, 16, %s1763_s13, [#allocation4], %s1562_s15, %s1562_s15, %s1563_s16  }
 0x688   :  { %1547 = dma.done.wait [#allocation4], 128  }
 0x689   :  { %1548 = vsyncadd [#allocation4], 4294967168 }
 0x68a   :  { %1052 = vsyncpa [#allocation3], 1 }
 0x68b   :  { %1053 = vsyncpa [#allocation6], 1 }
 0x68c   :  { %1054 = vsyncpa [#allocation9], 1 }
 0x68d   :  { %1055 = vsyncpa [#allocation12], 1 }
 0x68e   :  { %1056 = vsyncpa [#allocation4], 1 }

</bundles_post_ra>
